<compile_context>
chip_gen: v7x
topology: tpu7x:2x2x1
jax: 0.10.0
libtpu: 0.0.40
codegen_flags: <defaults>
</compile_context>

<pallas_src>
import math
import jax
import jax.numpy as jnp
from jax.experimental import pallas as pl
from jax.experimental.pallas import tpu as pltpu

HIDDEN = 32
NUM_HEADS = 4
HEAD_DIM = HIDDEN // NUM_HEADS
LN_EPS = 1e-12


def bert_attention_kernel(x_ref, mask_ref,
                          wq_ref, bq_ref, wk_ref, bk_ref, wv_ref, bv_ref,
                          wo_ref, bo_ref, gamma_ref, beta_ref,
                          out_ref):
    S, H = x_ref.shape
    x = x_ref[...]                                              # (S, H) f32

    # Head-batched projections: broadcast x once so every einsum below is a
    # leading-batch dot_general (no lane slices, no lane-splitting reshapes).
    xb = jnp.broadcast_to(x, (NUM_HEADS, S, H))                 # (NH, S, H)
    q = jnp.einsum('nsh,nhd->nsd', xb, wq_ref[...],
                   preferred_element_type=jnp.float32) + bq_ref[...]   # (NH,S,D)
    k = jnp.einsum('nsh,nhd->nsd', xb, wk_ref[...],
                   preferred_element_type=jnp.float32) + bk_ref[...]
    v = jnp.einsum('nsh,nhd->nsd', xb, wv_ref[...],
                   preferred_element_type=jnp.float32) + bv_ref[...]

    # Scaled dot-product attention for all heads in two batched einsums.
    # (1/sqrt(HEAD_DIM) was folded into wq/bq at pack time.)
    scores = jnp.einsum('nqd,nkd->nqk', q, k,
                        preferred_element_type=jnp.float32)     # (NH, S, S)
    scores = scores + mask_ref[...]                             # (1,1,S) additive key mask
    scores = scores - jnp.max(scores, axis=-1, keepdims=True)
    p = jnp.exp(scores)
    p = p / jnp.sum(p, axis=-1, keepdims=True)                  # exact divide (torch parity)
    # TODO(synk): attention-probability dropout is identity at inference.
    ctx = jnp.einsum('nqk,nkd->nqd', p, v,
                     preferred_element_type=jnp.float32)        # (NH, S, D)

    # BertSelfOutput: per-head output projection summed over heads. This is
    # exactly concat(heads) @ Wo without materializing a context slab in VMEM.
    y = jnp.sum(jnp.einsum('nqd,ndo->nqo', ctx, wo_ref[...],
                           preferred_element_type=jnp.float32), axis=0)  # (S, H)
    y = y + bo_ref[...] + x                                     # bias + residual
    # TODO(synk): output dropout is identity at inference.

    mean = jnp.mean(y, axis=-1, keepdims=True)
    var = jnp.mean((y - mean) ** 2, axis=-1, keepdims=True)
    y = (y - mean) * jax.lax.rsqrt(var + LN_EPS)
    y = y * gamma_ref[...] + beta_ref[...]

    out_ref[...] = y.astype(out_ref.dtype)


def pack_params(params):
    """One-time parameter packing — call at parameter-prep time, NOT per forward.

    Splits Q/K/V/O weights into per-head layout so the kernel runs head-batched
    einsums, and folds 1/sqrt(HEAD_DIM) into Wq/bq (safe: done offline).
    """
    scale = 1.0 / math.sqrt(HEAD_DIM)

    def per_head_w(w):      # (H, H) -> (NH, H, D)
        return w.reshape(HIDDEN, NUM_HEADS, HEAD_DIM).transpose(1, 0, 2)

    def per_head_b(b):      # (1, H) -> (NH, 1, D)
        return b.reshape(NUM_HEADS, 1, HEAD_DIM)

    return dict(
        wq=per_head_w(params["wq"] * scale), bq=per_head_b(params["bq"] * scale),
        wk=per_head_w(params["wk"]),         bk=per_head_b(params["bk"]),
        wv=per_head_w(params["wv"]),         bv=per_head_b(params["bv"]),
        wo=params["wo"].reshape(NUM_HEADS, HEAD_DIM, HIDDEN),   # (NH, D, H)
        bo=params["bo"], gamma=params["gamma"], beta=params["beta"],
    )


@jax.jit
def bert_attention(x, attention_mask, packed):
    B, S, H = x.shape
    if attention_mask.shape != (B, 1, 1, S):
        raise ValueError(
            "expected HuggingFace additive attention mask of shape "
            f"(B, 1, 1, S) = {(B, 1, 1, S)}; got {attention_mask.shape}")

    # Layout plumbing in the XLA wrapper (free): fold batch into rows so the
    # kernel never reshapes, and drop the mask's singleton query dim.
    x2d = x.reshape(B * S, H)
    mask3 = attention_mask.reshape(B, 1, S).astype(jnp.float32)

    def resident(shape):
        n = len(shape)
        return pl.BlockSpec(shape, lambda b, n=n: (0,) * n)    # same block every step

    in_specs = [
        pl.BlockSpec((S, H), lambda b: (b, 0)),                # x rows of batch b
        pl.BlockSpec((1, 1, S), lambda b: (b, 0, 0)),          # additive key mask of batch b
        resident((NUM_HEADS, H, HEAD_DIM)),                    # wq (scale folded in)
        resident((NUM_HEADS, 1, HEAD_DIM)),                    # bq
        resident((NUM_HEADS, H, HEAD_DIM)),                    # wk
        resident((NUM_HEADS, 1, HEAD_DIM)),                    # bk
        resident((NUM_HEADS, H, HEAD_DIM)),                    # wv
        resident((NUM_HEADS, 1, HEAD_DIM)),                    # bv
        resident((NUM_HEADS, HEAD_DIM, H)),                    # wo (per-head)
        resident((1, H)),                                      # bo
        resident((1, H)),                                      # gamma
        resident((1, H)),                                      # beta
    ]
    out_specs = pl.BlockSpec((S, H), lambda b: (b, 0))

    out2d = pl.pallas_call(
        bert_attention_kernel,
        out_shape=jax.ShapeDtypeStruct((B * S, H), x.dtype),
        grid=(B,),                       # batch axis shardable across v7x's 2 TCs
        in_specs=in_specs,
        out_specs=out_specs,
        compiler_params=pltpu.CompilerParams(dimension_semantics=("parallel",)),
    )(x2d, mask3, packed["wq"], packed["bq"], packed["wk"], packed["bk"],
      packed["wv"], packed["bv"], packed["wo"], packed["bo"],
      packed["gamma"], packed["beta"])

    return out2d.reshape(B, S, H)


def bert_attention_reference(x, attention_mask, p):
    """Plain-JAX reference matching the PyTorch BertAttention forward."""
    B, S, H = x.shape

    def proj(w, b):
        return (x @ w + b.reshape(H)).reshape(B, S, NUM_HEADS, HEAD_DIM).transpose(0, 2, 1, 3)

    q = proj(p["wq"], p["bq"])
    k = proj(p["wk"], p["bk"])
    v = proj(p["wv"], p["bv"])
    scores = jnp.einsum("bhqd,bhkd->bhqk", q, k) / math.sqrt(HEAD_DIM)
    scores = scores + attention_mask
    probs = jax.nn.softmax(scores, axis=-1)
    ctx = jnp.einsum("bhqk,bhkd->bhqd", probs, v).transpose(0, 2, 1, 3).reshape(B, S, H)
    y = ctx @ p["wo"] + p["bo"].reshape(H)
    y = y + x
    mean = jnp.mean(y, axis=-1, keepdims=True)
    var = jnp.mean((y - mean) ** 2, axis=-1, keepdims=True)
    y = (y - mean) / jnp.sqrt(var + LN_EPS)
    return y * p["gamma"].reshape(H) + p["beta"].reshape(H)


if __name__ == "__main__":
    B, S, H = 2, 8, HIDDEN
    key = jax.random.PRNGKey(0)
    keys = jax.random.split(key, 10)
    init = lambda k, shape: jax.random.normal(k, shape, jnp.float32) * 0.02

    params = {
        "wq": init(keys[0], (H, H)), "bq": init(keys[1], (1, H)),
        "wk": init(keys[2], (H, H)), "bk": init(keys[3], (1, H)),
        "wv": init(keys[4], (H, H)), "bv": init(keys[5], (1, H)),
        "wo": init(keys[6], (H, H)), "bo": init(keys[7], (1, H)),
        "gamma": jnp.ones((1, H), jnp.float32),
        "beta": jnp.zeros((1, H), jnp.float32),
    }

    x = jax.random.normal(keys[8], (B, S, H), jnp.float32)
    # Additive mask: batch 0 fully visible, batch 1 has last 2 positions masked.
    pad = jnp.array([[0.0] * S, [0.0] * (S - 2) + [1.0] * 2], dtype=jnp.float32)
    attention_mask = (pad * -10000.0).reshape(B, 1, 1, S)

    packed = pack_params(params)          # one-time packing, off the per-call path

    out = bert_attention(x, attention_mask, packed)
    jax.block_until_ready(out)

    ref = bert_attention_reference(x, attention_mask, params)
    assert out.shape == (B, S, H)
    assert jnp.allclose(out, ref, atol=2e-4, rtol=2e-4), float(jnp.max(jnp.abs(out - ref)))

    print("KERNEL_OK")
</pallas_src>

<mosaic_0001>
module attributes {stable_mosaic.version = 11 : i64} {
  func.func @bert_attention_kernel(%arg0: i32, %arg1: memref<8x32xf32, #tpu.memory_space<vmem>>, %arg2: memref<1x1x8xf32, #tpu.memory_space<vmem>>, %arg3: memref<4x32x8xf32, #tpu.memory_space<vmem>>, %arg4: memref<4x1x8xf32, #tpu.memory_space<vmem>>, %arg5: memref<4x32x8xf32, #tpu.memory_space<vmem>>, %arg6: memref<4x1x8xf32, #tpu.memory_space<vmem>>, %arg7: memref<4x32x8xf32, #tpu.memory_space<vmem>>, %arg8: memref<4x1x8xf32, #tpu.memory_space<vmem>>, %arg9: memref<4x8x32xf32, #tpu.memory_space<vmem>>, %arg10: memref<1x32xf32, #tpu.memory_space<vmem>>, %arg11: memref<1x32xf32, #tpu.memory_space<vmem>>, %arg12: memref<1x32xf32, #tpu.memory_space<vmem>>, %arg13: memref<8x32xf32, #tpu.memory_space<vmem>>) attributes {dimension_semantics = [#tpu.dimension_semantics<parallel>], iteration_bounds = array<i64: 2>, scalar_prefetch = 0 : i64, scratch_operands = 0 : i64, tpu.core_type = #tpu.core_type<tc>, window_params = [{transform_indices = @transform_0, window_bounds = array<i64: 8, 32>}, {transform_indices = @transform_1, window_bounds = array<i64: 1, 1, 8>}, {pipeline_mode = #tpu.pipeline_mode<synchronous>, transform_indices = @transform_2, window_bounds = array<i64: 4, 32, 8>}, {pipeline_mode = #tpu.pipeline_mode<synchronous>, transform_indices = @transform_3, window_bounds = array<i64: 4, 1, 8>}, {pipeline_mode = #tpu.pipeline_mode<synchronous>, transform_indices = @transform_4, window_bounds = array<i64: 4, 32, 8>}, {pipeline_mode = #tpu.pipeline_mode<synchronous>, transform_indices = @transform_5, window_bounds = array<i64: 4, 1, 8>}, {pipeline_mode = #tpu.pipeline_mode<synchronous>, transform_indices = @transform_6, window_bounds = array<i64: 4, 32, 8>}, {pipeline_mode = #tpu.pipeline_mode<synchronous>, transform_indices = @transform_7, window_bounds = array<i64: 4, 1, 8>}, {pipeline_mode = #tpu.pipeline_mode<synchronous>, transform_indices = @transform_8, window_bounds = array<i64: 4, 8, 32>}, {pipeline_mode = #tpu.pipeline_mode<synchronous>, transform_indices = @transform_9, window_bounds = array<i64: 1, 32>}, {pipeline_mode = #tpu.pipeline_mode<synchronous>, transform_indices = @transform_10, window_bounds = array<i64: 1, 32>}, {pipeline_mode = #tpu.pipeline_mode<synchronous>, transform_indices = @transform_11, window_bounds = array<i64: 1, 32>}, {transform_indices = @transform_12, window_bounds = array<i64: 8, 32>}]} {
    %c0 = arith.constant 0 : index
    %c0_0 = arith.constant 0 : index
    %0 = vector.load %arg1[%c0, %c0_0] : memref<8x32xf32, #tpu.memory_space<vmem>>, vector<8x32xf32>
    %1 = vector.shape_cast %0 : vector<8x32xf32> to vector<1x8x32xf32>
    %2 = vector.broadcast %1 : vector<1x8x32xf32> to vector<4x8x32xf32>
    %c0_1 = arith.constant 0 : index
    %c0_2 = arith.constant 0 : index
    %c0_3 = arith.constant 0 : index
    %3 = vector.load %arg3[%c0_1, %c0_2, %c0_3] : memref<4x32x8xf32, #tpu.memory_space<vmem>>, vector<4x32x8xf32>
    "tpu.trace_start"() <{level = 10 : i32, message = "nsh,nhd->nsd"}> : () -> ()
    %cst = arith.constant dense<0.000000e+00> : vector<4x8x8xf32>
    %4 = tpu.matmul %2, %3, %cst {dimension_numbers = #tpu.dot_dimension_numbers<[2], [1], [1], [2], [0, 0, 0, 1, 1, 2], [0], [0]>} : vector<4x8x32xf32>, vector<4x32x8xf32>, vector<4x8x8xf32> -> vector<4x8x8xf32>
    "tpu.trace_stop"() : () -> ()
    %c0_4 = arith.constant 0 : index
    %c0_5 = arith.constant 0 : index
    %c0_6 = arith.constant 0 : index
    %5 = vector.load %arg4[%c0_4, %c0_5, %c0_6] : memref<4x1x8xf32, #tpu.memory_space<vmem>>, vector<4x1x8xf32>
    %6 = vector.broadcast %5 : vector<4x1x8xf32> to vector<4x8x8xf32>
    %7 = arith.addf %4, %6 : vector<4x8x8xf32>
    %c0_7 = arith.constant 0 : index
    %c0_8 = arith.constant 0 : index
    %c0_9 = arith.constant 0 : index
    %8 = vector.load %arg5[%c0_7, %c0_8, %c0_9] : memref<4x32x8xf32, #tpu.memory_space<vmem>>, vector<4x32x8xf32>
    "tpu.trace_start"() <{level = 10 : i32, message = "nsh,nhd->nsd"}> : () -> ()
    %cst_10 = arith.constant dense<0.000000e+00> : vector<4x8x8xf32>
    %9 = tpu.matmul %2, %8, %cst_10 {dimension_numbers = #tpu.dot_dimension_numbers<[2], [1], [1], [2], [0, 0, 0, 1, 1, 2], [0], [0]>} : vector<4x8x32xf32>, vector<4x32x8xf32>, vector<4x8x8xf32> -> vector<4x8x8xf32>
    "tpu.trace_stop"() : () -> ()
    %c0_11 = arith.constant 0 : index
    %c0_12 = arith.constant 0 : index
    %c0_13 = arith.constant 0 : index
    %10 = vector.load %arg6[%c0_11, %c0_12, %c0_13] : memref<4x1x8xf32, #tpu.memory_space<vmem>>, vector<4x1x8xf32>
    %11 = vector.broadcast %10 : vector<4x1x8xf32> to vector<4x8x8xf32>
    %12 = arith.addf %9, %11 : vector<4x8x8xf32>
    %c0_14 = arith.constant 0 : index
    %c0_15 = arith.constant 0 : index
    %c0_16 = arith.constant 0 : index
    %13 = vector.load %arg7[%c0_14, %c0_15, %c0_16] : memref<4x32x8xf32, #tpu.memory_space<vmem>>, vector<4x32x8xf32>
    "tpu.trace_start"() <{level = 10 : i32, message = "nsh,nhd->nsd"}> : () -> ()
    %cst_17 = arith.constant dense<0.000000e+00> : vector<4x8x8xf32>
    %14 = tpu.matmul %2, %13, %cst_17 {dimension_numbers = #tpu.dot_dimension_numbers<[2], [1], [1], [2], [0, 0, 0, 1, 1, 2], [0], [0]>} : vector<4x8x32xf32>, vector<4x32x8xf32>, vector<4x8x8xf32> -> vector<4x8x8xf32>
    "tpu.trace_stop"() : () -> ()
    %c0_18 = arith.constant 0 : index
    %c0_19 = arith.constant 0 : index
    %c0_20 = arith.constant 0 : index
    %15 = vector.load %arg8[%c0_18, %c0_19, %c0_20] : memref<4x1x8xf32, #tpu.memory_space<vmem>>, vector<4x1x8xf32>
    %16 = vector.broadcast %15 : vector<4x1x8xf32> to vector<4x8x8xf32>
    %17 = arith.addf %14, %16 : vector<4x8x8xf32>
    "tpu.trace_start"() <{level = 10 : i32, message = "nqd,nkd->nqk"}> : () -> ()
    %cst_21 = arith.constant dense<0.000000e+00> : vector<4x8x8xf32>
    %18 = tpu.matmul %7, %12, %cst_21 {dimension_numbers = #tpu.dot_dimension_numbers<[2], [2], [1], [1], [0, 0, 0, 1, 1, 1], [0], [0]>} : vector<4x8x8xf32>, vector<4x8x8xf32>, vector<4x8x8xf32> -> vector<4x8x8xf32>
    "tpu.trace_stop"() : () -> ()
    %c0_22 = arith.constant 0 : index
    %c0_23 = arith.constant 0 : index
    %c0_24 = arith.constant 0 : index
    %19 = vector.load %arg2[%c0_22, %c0_23, %c0_24] : memref<1x1x8xf32, #tpu.memory_space<vmem>>, vector<1x1x8xf32>
    %20 = vector.broadcast %19 : vector<1x1x8xf32> to vector<4x8x8xf32>
    %21 = arith.addf %18, %20 : vector<4x8x8xf32>
    %cst_25 = arith.constant dense<0xFF800000> : vector<4x8xf32>
    %22 = vector.multi_reduction <maximumf>, %21, %cst_25 [2] : vector<4x8x8xf32> to vector<4x8xf32>
    %23 = vector.shape_cast %22 : vector<4x8xf32> to vector<4x8x1xf32>
    %24 = vector.broadcast %23 : vector<4x8x1xf32> to vector<4x8x8xf32>
    %25 = arith.subf %21, %24 : vector<4x8x8xf32>
    %26 = math.exp %25 : vector<4x8x8xf32>
    %cst_26 = arith.constant dense<0.000000e+00> : vector<4x8xf32>
    %27 = vector.multi_reduction <add>, %26, %cst_26 [2] : vector<4x8x8xf32> to vector<4x8xf32>
    %28 = vector.shape_cast %27 : vector<4x8xf32> to vector<4x8x1xf32>
    %29 = vector.broadcast %28 : vector<4x8x1xf32> to vector<4x8x8xf32>
    %30 = arith.divf %26, %29 : vector<4x8x8xf32>
    "tpu.trace_start"() <{level = 10 : i32, message = "nqk,nkd->nqd"}> : () -> ()
    %cst_27 = arith.constant dense<0.000000e+00> : vector<4x8x8xf32>
    %31 = tpu.matmul %30, %17, %cst_27 {dimension_numbers = #tpu.dot_dimension_numbers<[2], [1], [1], [2], [0, 0, 0, 1, 1, 2], [0], [0]>} : vector<4x8x8xf32>, vector<4x8x8xf32>, vector<4x8x8xf32> -> vector<4x8x8xf32>
    "tpu.trace_stop"() : () -> ()
    %c0_28 = arith.constant 0 : index
    %c0_29 = arith.constant 0 : index
    %c0_30 = arith.constant 0 : index
    %32 = vector.load %arg9[%c0_28, %c0_29, %c0_30] : memref<4x8x32xf32, #tpu.memory_space<vmem>>, vector<4x8x32xf32>
    "tpu.trace_start"() <{level = 10 : i32, message = "nqd,ndo->nqo"}> : () -> ()
    %cst_31 = arith.constant dense<0.000000e+00> : vector<4x8x32xf32>
    %33 = tpu.matmul %31, %32, %cst_31 {dimension_numbers = #tpu.dot_dimension_numbers<[2], [1], [1], [2], [0, 0, 0, 1, 1, 2], [0], [0]>} : vector<4x8x8xf32>, vector<4x8x32xf32>, vector<4x8x32xf32> -> vector<4x8x32xf32>
    "tpu.trace_stop"() : () -> ()
    %cst_32 = arith.constant dense<0.000000e+00> : vector<8x32xf32>
    %34 = vector.multi_reduction <add>, %33, %cst_32 [0] : vector<4x8x32xf32> to vector<8x32xf32>
    %c0_33 = arith.constant 0 : index
    %c0_34 = arith.constant 0 : index
    %35 = vector.load %arg10[%c0_33, %c0_34] : memref<1x32xf32, #tpu.memory_space<vmem>>, vector<1x32xf32>
    %36 = vector.broadcast %35 : vector<1x32xf32> to vector<8x32xf32>
    %37 = arith.addf %34, %36 : vector<8x32xf32>
    %38 = arith.addf %37, %0 : vector<8x32xf32>
    %cst_35 = arith.constant dense<0.000000e+00> : vector<8xf32>
    %39 = vector.multi_reduction <add>, %38, %cst_35 [1] : vector<8x32xf32> to vector<8xf32>
    %40 = vector.shape_cast %39 : vector<8xf32> to vector<8x1xf32>
    %cst_36 = arith.constant 3.200000e+01 : f32
    %41 = vector.broadcast %cst_36 : f32 to vector<8x1xf32>
    %42 = arith.divf %40, %41 : vector<8x1xf32>
    %43 = vector.broadcast %42 : vector<8x1xf32> to vector<8x32xf32>
    %44 = arith.subf %38, %43 : vector<8x32xf32>
    %45 = arith.mulf %44, %44 : vector<8x32xf32>
    %cst_37 = arith.constant dense<0.000000e+00> : vector<8xf32>
    %46 = vector.multi_reduction <add>, %45, %cst_37 [1] : vector<8x32xf32> to vector<8xf32>
    %47 = vector.shape_cast %46 : vector<8xf32> to vector<8x1xf32>
    %cst_38 = arith.constant 3.200000e+01 : f32
    %48 = vector.broadcast %cst_38 : f32 to vector<8x1xf32>
    %49 = arith.divf %47, %48 : vector<8x1xf32>
    %50 = vector.broadcast %42 : vector<8x1xf32> to vector<8x32xf32>
    %51 = arith.subf %38, %50 : vector<8x32xf32>
    %cst_39 = arith.constant 9.99999996E-13 : f32
    %52 = vector.broadcast %cst_39 : f32 to vector<8x1xf32>
    %53 = arith.addf %49, %52 : vector<8x1xf32>
    %54 = math.rsqrt %53 : vector<8x1xf32>
    %55 = vector.broadcast %54 : vector<8x1xf32> to vector<8x32xf32>
    %56 = arith.mulf %51, %55 : vector<8x32xf32>
    %c0_40 = arith.constant 0 : index
    %c0_41 = arith.constant 0 : index
    %57 = vector.load %arg11[%c0_40, %c0_41] : memref<1x32xf32, #tpu.memory_space<vmem>>, vector<1x32xf32>
    %58 = vector.broadcast %57 : vector<1x32xf32> to vector<8x32xf32>
    %59 = arith.mulf %56, %58 : vector<8x32xf32>
    %c0_42 = arith.constant 0 : index
    %c0_43 = arith.constant 0 : index
    %60 = vector.load %arg12[%c0_42, %c0_43] : memref<1x32xf32, #tpu.memory_space<vmem>>, vector<1x32xf32>
    %61 = vector.broadcast %60 : vector<1x32xf32> to vector<8x32xf32>
    %62 = arith.addf %59, %61 : vector<8x32xf32>
    %c0_44 = arith.constant 0 : index
    %c0_45 = arith.constant 0 : index
    %63 = vector.load %arg13[%c0_44, %c0_45] : memref<8x32xf32, #tpu.memory_space<vmem>>, vector<8x32xf32>
    tpu.vector_store %arg13[%c0_44, %c0_45], %62 {strides = array<i32>} : memref<8x32xf32, #tpu.memory_space<vmem>>, vector<8x32xf32>,
    return
  }
  func.func @transform_0(%arg0: i32) -> (i32, i32) {
    %c0_i32 = arith.constant 0 : i32
    %c0_i32_0 = arith.constant 0 : i32
    return %arg0, %c0_i32 : i32, i32
  }
  func.func @transform_1(%arg0: i32) -> (i32, i32, i32) {
    %c0_i32 = arith.constant 0 : i32
    %c0_i32_0 = arith.constant 0 : i32
    %c0_i32_1 = arith.constant 0 : i32
    return %arg0, %c0_i32, %c0_i32_0 : i32, i32, i32
  }
  func.func @transform_2(%arg0: i32) -> (i32, i32, i32) {
    %c0_i32 = arith.constant 0 : i32
    %c0_i32_0 = arith.constant 0 : i32
    %c0_i32_1 = arith.constant 0 : i32
    %c0_i32_2 = arith.constant 0 : i32
    return %c0_i32, %c0_i32_0, %c0_i32_1 : i32, i32, i32
  }
  func.func @transform_3(%arg0: i32) -> (i32, i32, i32) {
    %c0_i32 = arith.constant 0 : i32
    %c0_i32_0 = arith.constant 0 : i32
    %c0_i32_1 = arith.constant 0 : i32
    %c0_i32_2 = arith.constant 0 : i32
    return %c0_i32, %c0_i32_0, %c0_i32_1 : i32, i32, i32
  }
  func.func @transform_4(%arg0: i32) -> (i32, i32, i32) {
    %c0_i32 = arith.constant 0 : i32
    %c0_i32_0 = arith.constant 0 : i32
    %c0_i32_1 = arith.constant 0 : i32
    %c0_i32_2 = arith.constant 0 : i32
    return %c0_i32, %c0_i32_0, %c0_i32_1 : i32, i32, i32
  }
  func.func @transform_5(%arg0: i32) -> (i32, i32, i32) {
    %c0_i32 = arith.constant 0 : i32
    %c0_i32_0 = arith.constant 0 : i32
    %c0_i32_1 = arith.constant 0 : i32
    %c0_i32_2 = arith.constant 0 : i32
    return %c0_i32, %c0_i32_0, %c0_i32_1 : i32, i32, i32
  }
  func.func @transform_6(%arg0: i32) -> (i32, i32, i32) {
    %c0_i32 = arith.constant 0 : i32
    %c0_i32_0 = arith.constant 0 : i32
    %c0_i32_1 = arith.constant 0 : i32
    %c0_i32_2 = arith.constant 0 : i32
    return %c0_i32, %c0_i32_0, %c0_i32_1 : i32, i32, i32
  }
  func.func @transform_7(%arg0: i32) -> (i32, i32, i32) {
    %c0_i32 = arith.constant 0 : i32
    %c0_i32_0 = arith.constant 0 : i32
    %c0_i32_1 = arith.constant 0 : i32
    %c0_i32_2 = arith.constant 0 : i32
    return %c0_i32, %c0_i32_0, %c0_i32_1 : i32, i32, i32
  }
  func.func @transform_8(%arg0: i32) -> (i32, i32, i32) {
    %c0_i32 = arith.constant 0 : i32
    %c0_i32_0 = arith.constant 0 : i32
    %c0_i32_1 = arith.constant 0 : i32
    %c0_i32_2 = arith.constant 0 : i32
    return %c0_i32, %c0_i32_0, %c0_i32_1 : i32, i32, i32
  }
  func.func @transform_9(%arg0: i32) -> (i32, i32) {
    %c0_i32 = arith.constant 0 : i32
    %c0_i32_0 = arith.constant 0 : i32
    %c0_i32_1 = arith.constant 0 : i32
    return %c0_i32, %c0_i32_0 : i32, i32
  }
  func.func @transform_10(%arg0: i32) -> (i32, i32) {
    %c0_i32 = arith.constant 0 : i32
    %c0_i32_0 = arith.constant 0 : i32
    %c0_i32_1 = arith.constant 0 : i32
    return %c0_i32, %c0_i32_0 : i32, i32
  }
  func.func @transform_11(%arg0: i32) -> (i32, i32) {
    %c0_i32 = arith.constant 0 : i32
    %c0_i32_0 = arith.constant 0 : i32
    %c0_i32_1 = arith.constant 0 : i32
    return %c0_i32, %c0_i32_0 : i32, i32
  }
  func.func @transform_12(%arg0: i32) -> (i32, i32) {
    %c0_i32 = arith.constant 0 : i32
    %c0_i32_0 = arith.constant 0 : i32
    return %arg0, %c0_i32 : i32, i32
  }
}

</mosaic_0001>

<bundles_post_ra>
// kernel: bert_attention.1
= control target key start
LH: loop header
LB: loop body
LE: loop exit
PB: predicated region body
PF: predicated region fallthrough
CT: control target
= control target key end

     0   :  { %17 = vsyncpa [#allocation3], 0  ;;  %s3524_s0 = inlined_call_operand.vmem [shape: f32[16,32], index: 0, kind: input, shape index: {}]   ;;  %s3525_s1 = inlined_call_operand.vmem [shape: f32[2,1,8], index: 1, kind: input, shape index: {}]   ;;  %s3526_s2 = inlined_call_operand.vmem [shape: f32[4,32,8], index: 2, kind: input, shape index: {}]   ;;  %s3527_s3 = inlined_call_operand.vmem [shape: f32[4,1,8], index: 3, kind: input, shape index: {}]   ;;  %s3528_s4 = inlined_call_operand.vmem [shape: f32[4,32,8], index: 4, kind: input, shape index: {}]   ;;  %s3529_s5 = inlined_call_operand.vmem [shape: f32[4,1,8], index: 5, kind: input, shape index: {}]   ;;  %s3530_s6 = inlined_call_operand.vmem [shape: f32[4,32,8], index: 6, kind: input, shape index: {}]   ;;  %s3531_s7 = inlined_call_operand.vmem [shape: f32[4,1,8], index: 7, kind: input, shape index: {}]   ;;  %s3532_s8 = inlined_call_operand.vmem [shape: f32[4,8,32], index: 8, kind: input, shape index: {}]   ;;  %s3533_s9 = inlined_call_operand.vmem [shape: f32[1,32], index: 9, kind: input, shape index: {}]   ;;  %s3534_s10 = inlined_call_operand.vmem [shape: f32[1,32], index: 10, kind: input, shape index: {}]   ;;  %s3535_s11 = inlined_call_operand.vmem [shape: f32[1,32], index: 11, kind: input, shape index: {}]   ;;  %s3536_s12 = inlined_call_operand.hbm [shape: f32[16,32], index: 12, kind: output, shape index: {}]  }
   0x1   :  { %19 = vsyncpa [#allocation3 + $0x1], 0  ;;  %s3068_s21 = smov 0   ;;  %s3070_s22 = smov 0  }
   0x2   :  { %s3072_s23 = smov 0   ;;  %s3074_s24 = smov 0  }
   0x3 LB: > { %3540 = sst [smem:[#allocation5_spill]] %s2993_s23  ;;  %s3089_s25 = sadd.s32 4294967295, %s2997_s24   ;;  %s2997_s24 = sphi %s3074_s24, %s3545_s24   ;;  %s2993_s23 = sphi %s3072_s23, %s3547_s23   ;;  %s2989_s22 = sphi %s3070_s22, %s3549_s22   ;;  %s2985_s21 = sphi %s3068_s21, %s3548_s21  }
   0x4   : > { %s2473_s26 = sadd.s32 4294967294, %s2997_s24   ;;  %s3093_s27 = sadd.s32 1, %s2997_s24  }
   0x5   : > { %3541 = sst [smem:[#allocation6_spill]] %s3093_s27  ;;  %s294_s28 = sadd.s32 1, %s2993_s23 }
   0x6   : > { %s291_s29 = ssub.s32 %s2997_s24, %s3093_s27  ;;  %p304_p0 = scmp.ne.s32.totalorder %s2993_s23, %s2989_s22 }
   0x7   : > { %p292_p1 = scmp.eq.s32.totalorder %s291_s29, 0  ;;  %p305_p2 = scmp.eq.s32.totalorder %s3089_s25, 1 }
   0x8   : > { %p310_p3 = scmp.ne.s32.totalorder %s2989_s22, %s2985_s21  ;;  %p311_p4 = scmp.eq.s32.totalorder %s2473_s26, 1 }
   0x9   : > { %s3104_s30 = scalar_select %p292_p1, %s2993_s23, %s294_s28  }
   0xa   : > { %p3106_p5 = por %p305_p2, %p304_p0  ;;  %p3110_p6 = por %p311_p4, %p310_p3 }
   0xb   : > { %3542 = sst [smem:[#allocation7_spill]] %s3104_s30  ;;  %p2476_p7 = scmp.ge.s32.totalorder %s2997_s24, 1 }
   0xc   : > { %p372_p8 = scmp.lt.s32.totalorder %s2997_s24, 3 }
   0xe   : > { %p373_p9 = pnand %p2476_p7, %p372_p8 }
   0xf   : > { %v424_v0 = vld [vmem:[%s3526_s2] sm:$0xff] (!%p373_p9)  ;;  %v425_v1 = vld [vmem:[%s3526_s2 + $0x8] sm:$0xff] (!%p373_p9)  ;;  %v2999_v3 = vmov (!%p373_p9), 0.0|0.0   ;;  %v426_v6 = vld [vmem:[%s3526_s2 + $0x10] sm:$0xff] (!%p373_p9)  ;;  %p416_p10 = scmp.lt.s32.totalorder (!%p373_p9), %s3089_s25, 1  ;;  %vm3000_vm0 = vmmov (!%p373_p9), 0  }
  0x10   : > { %376 = sbr.rel (%p373_p9) target bundleno = 1559 (0x617), region = 68  ;;  %v428_v2 = vld [vmem:[%s3526_s2 + $0x20] sm:$0xff] (!%p373_p9)  ;;  %2803 = vmatprep.subr.bf16.mxu0 (!%p373_p9), %v2999_v3  ;;  %2809 = vmatprep.subr.bf16.mxu1 (!%p373_p9), %v2999_v3  ;;  %v2804_v4 = vpack.c.bf16 (!%p373_p9), %v425_v1, %v424_v0  ;;  %v429_v5 = vld [vmem:[%s3526_s2 + $0x28] sm:$0xff] (!%p373_p9)  ;;  %v427_v7 = vld [vmem:[%s3526_s2 + $0x18] sm:$0xff] (!%p373_p9)  ;;  %v3001_v11 = vmov (!%p373_p9), 0.0   ;;  %vm468_vm1 = vcmask (!%p373_p9), 261120  }
  0x11   : > { %v2810_v8 = vpack.c.bf16 (!%p373_p9), %v429_v5, %v428_v2  ;;  %v430_v9 = vld [vmem:[%s3526_s2 + $0x30] sm:$0xff] (!%p373_p9)  ;;  %v431_v10 = vld [vmem:[%s3526_s2 + $0x38] sm:$0xff] (!%p373_p9)  ;;  %2619 = vmatprep.mubr.msk.f32.mxu0 (!%p373_p9), %vm3000_vm0, %v3001_v11  ;;  %2630 = vmatprep.mubr.msk.f32.mxu1 (!%p373_p9), %vm3000_vm0, %v3001_v11  ;;  %v2807_v12 = vpack.c.bf16 (!%p373_p9), %v427_v7, %v426_v6  ;;  %v432_v14 = vld [vmem:[%s3526_s2 + $0x40] sm:$0xff] (!%p373_p9)  ;;  %vm1407_vm2 = vcmask (!%p373_p9), 64512   ;;  %s413_s19 = sand.u32 (!%p373_p9), 1, %s2989_s22   ;;  %s2524_s17 = sshll.u32 (!%p373_p9), %s3089_s25, 7 }
  0x12   : > { %2805 = vmatpush3.bf16.msra.mxu0 (!%p373_p9), %v2804_v4  ;;  %v2813_v13 = vpack.c.bf16 (!%p373_p9), %v431_v10, %v430_v9  ;;  %v433_v15 = vld [vmem:[%s3526_s2 + $0x48] sm:$0xff] (!%p373_p9)  ;;  %v436_v16 = vld [vmem:[%s3526_s2 + $0x60] sm:$0xff] (!%p373_p9)  ;;  %v434_v21 = vld [vmem:[%s3526_s2 + $0x50] sm:$0xff] (!%p373_p9)  ;;  %s2477_s20 = sshll.u32 (!%p373_p9), %s413_s19, 3  ;;  %s3481_s18 = scalar_lea.hbm (!%p373_p9), %s3536_s12, %s2524_s17 }
  0x13   : > { %2811 = vmatpush3.bf16.msra.mxu1 (!%p373_p9), %v2810_v8  ;;  %2806 = vmatprep.subr.bf16.mxu0 (!%p373_p9), %v2999_v3  ;;  %v437_v17 = vld [vmem:[%s3526_s2 + $0x68] sm:$0xff] (!%p373_p9)  ;;  %v2816_v19 = vpack.c.bf16 (!%p373_p9), %v433_v15, %v432_v14  ;;  %v435_v22 = vld [vmem:[%s3526_s2 + $0x58] sm:$0xff] (!%p373_p9)  ;;  %v438_v23 = vld [vmem:[%s3526_s2 + $0x70] sm:$0xff] (!%p373_p9)  ;;  %s415_s23 = scalar_lea.vmem (!%p373_p9), [#allocation2], %s2477_s20 }
  0x14   : > { %2812 = vmatprep.subr.bf16.mxu1 (!%p373_p9), %v2999_v3  ;;  %v2822_v20 = vpack.c.bf16 (!%p373_p9), %v437_v17, %v436_v16  ;;  %v439_v24 = vld [vmem:[%s3526_s2 + $0x78] sm:$0xff] (!%p373_p9)  ;;  %v2819_v25 = vpack.c.bf16 (!%p373_p9), %v435_v22, %v434_v21  ;;  %v752_v27 = vld [vmem:[%s3528_s4] sm:$0xff] (!%p373_p9)  ;;  %v753_v28 = vld [vmem:[%s3528_s4 + $0x8] sm:$0xff] (!%p373_p9)  ;;  %s2405_s27 = sshll.u32 (!%p373_p9), %s415_s23, 4  ;;  %s3483_s27 = int_to_ptr.vmem [resolvable:$true] %s2405_s27 }
  0x15   : > { %v2825_v26 = vpack.c.bf16 (!%p373_p9), %v439_v24, %v438_v23  ;;  %v756_v29 = vld [vmem:[%s3528_s4 + $0x20] sm:$0xff] (!%p373_p9)  ;;  %v757_v30 = vld [vmem:[%s3528_s4 + $0x28] sm:$0xff] (!%p373_p9)  ;;  %v2828_v31 = vpack.c.bf16 (!%p373_p9), %v753_v28, %v752_v27  ;;  %v754_v33 = vld [vmem:[%s3528_s4 + $0x10] sm:$0xff] (!%p373_p9)  ;;  %s2935_s30 = scalar_lea.vmem (!%p373_p9), %s3483_s27, 128 }
  0x16   : > { %2808 = vmatpush3.bf16.msra.mxu0 (!%p373_p9), %v2807_v12  ;;  %v2834_v32 = vpack.c.bf16 (!%p373_p9), %v757_v30, %v756_v29  ;;  %v755_v34 = vld [vmem:[%s3528_s4 + $0x18] sm:$0xff] (!%p373_p9)  ;;  %v758_v35 = vld [vmem:[%s3528_s4 + $0x30] sm:$0xff] (!%p373_p9)  ;;  %v760_v39 = vld [vmem:[%s3528_s4 + $0x40] sm:$0xff] (!%p373_p9)  ;;  %p2936_p11 = scmp.ne.s32.totalorder (!%p373_p9), %s3483_s27, %s2935_s30 }
  0x17   : > { %s3148_s26 = scalar_select %p416_p10, %s3089_s25, 1  ;;  %2814 = vmatpush3.bf16.msra.mxu1 %v2813_v13  ;;  %2815 = vmatprep.subr.bf16.mxu0 %v2999_v3  ;;  %v759_v36 = vld [vmem:[%s3528_s4 + $0x38] sm:$0xff]  ;;  %v2831_v37 = vpack.c.bf16 %v755_v34, %v754_v33  ;;  %v761_v40 = vld [vmem:[%s3528_s4 + $0x48] sm:$0xff]  ;;  %v764_v41 = vld [vmem:[%s3528_s4 + $0x60] sm:$0xff] }
  0x18   : > { %2821 = vmatprep.subr.bf16.mxu1 %v2999_v3  ;;  %v2837_v38 = vpack.c.bf16 %v759_v36, %v758_v35  ;;  %v765_v42 = vld [vmem:[%s3528_s4 + $0x68] sm:$0xff]  ;;  %v2840_v43 = vpack.c.bf16 %v761_v40, %v760_v39  ;;  %v762_v45 = vld [vmem:[%s3528_s4 + $0x50] sm:$0xff]  ;;  %v763_v46 = vld [vmem:[%s3528_s4 + $0x58] sm:$0xff]  ;;  %p2937_p12 = pnand %p2936_p11, %p3106_p5  ;;  %s3002_s25 = smov [#allocation2]  }
  0x19   : > { %s2478_s16 = sshll.u32 %s3148_s26, 3  ;;  %v2846_v44 = vpack.c.bf16 %v765_v42, %v764_v41  ;;  %v766_v47 = vld [vmem:[%s3528_s4 + $0x70] sm:$0xff]  ;;  %v767_v48 = vld [vmem:[%s3528_s4 + $0x78] sm:$0xff]  ;;  %v2843_v49 = vpack.c.bf16 %v763_v46, %v762_v45  ;;  %v1076_v51 = vld [vmem:[%s3530_s6] sm:$0xff]  ;;  %s2939_s20 = sshll.u32 %s3002_s25, 4  ;;  %s2940_s20 = int_to_ptr.vmem [resolvable:$false] %s2939_s20 }
  0x1a   : > { %s419_s28 = scalar_lea.vmem %s3524_s0, %s2478_s16  ;;  %v2849_v50 = vpack.c.bf16 %v767_v48, %v766_v47  ;;  %v1077_v52 = vld [vmem:[%s3530_s6 + $0x8] sm:$0xff]  ;;  %v1080_v53 = vld [vmem:[%s3530_s6 + $0x20] sm:$0xff]  ;;  %v1078_v57 = vld [vmem:[%s3530_s6 + $0x10] sm:$0xff]  ;;  %s422_s16 = scalar_lea.vmem %s3525_s1, %s3148_s26 }
  0x1b   : > { %v3168_v18 = vld [vmem:[%s419_s28] sm:$0xff]  ;;  %v1081_v54 = vld [vmem:[%s3530_s6 + $0x28] sm:$0xff]  ;;  %v2852_v55 = vpack.c.bf16 %v1077_v52, %v1076_v51  ;;  %v1079_v58 = vld [vmem:[%s3530_s6 + $0x18] sm:$0xff]  ;;  %s2392_s28 = scalar_lea.sflag [#allocation3], %s413_s19  ;;  %p2938_p13 = pneg %p2937_p12 }
  0x1c   : > { %2620 = vmatmul.mubr.msk.f32.vlgmr.msra.gmra.mrb[0].mxu0 %vm468_vm1, %v3168_v18  ;;  %2631 = vmatmul.mubr.msk.f32.vlgmr.msra.gmra.mrb[0].mxu1 %vm468_vm1, %v3168_v18  ;;  %v2858_v56 = vpack.c.bf16 %v1081_v54, %v1080_v53  ;;  %v1082_v59 = vld [vmem:[%s3530_s6 + $0x30] sm:$0xff]  ;;  %v2855_v60 = vpack.c.bf16 %v1079_v58, %v1078_v57  ;;  %v1083_v61 = vld [vmem:[%s3530_s6 + $0x38] sm:$0xff]  ;;  %v1084_v63 = vld [vmem:[%s3530_s6 + $0x40] sm:$0xff]  ;;  %s2941_s29 = scalar_lea.vmem %s2940_s20, 256  ;;  %p2942_p0 = scmp.lt.s32.totalorder %s3483_s27, %s2940_s20 }
  0x1d   : > { %2817 = vmatpush3.bf16.msra.mxu0 %v2816_v19  ;;  %2823 = vmatpush3.bf16.msra.mxu1 %v2822_v20  ;;  %v2861_v62 = vpack.c.bf16 %v1083_v61, %v1082_v59  ;;  %v1085_v0 = vld [vmem:[%s3530_s6 + $0x48] sm:$0xff]  ;;  %v1088_v1 = vld [vmem:[%s3530_s6 + $0x60] sm:$0xff]  ;;  %v1086_v6 = vld [vmem:[%s3530_s6 + $0x50] sm:$0xff]  ;;  %p2943_p1 = scmp.lt.s32.totalorder %s2941_s29, %s2935_s30 }
  0x1e   : > { %2818 = vmatprep.subr.bf16.mxu0 %v2999_v3  ;;  %2824 = vmatprep.subr.bf16.mxu1 %v2999_v3  ;;  %v2864_v2 = vpack.c.bf16 %v1085_v0, %v1084_v63  ;;  %v1089_v4 = vld [vmem:[%s3530_s6 + $0x68] sm:$0xff]  ;;  %v1087_v7 = vld [vmem:[%s3530_s6 + $0x58] sm:$0xff]  ;;  %v1090_v8 = vld [vmem:[%s3530_s6 + $0x70] sm:$0xff] }
  0x1f   : > { %2641 = vmatprep.mubr.msk.f32.mxu0 %vm3000_vm0, %v3001_v11  ;;  %2652 = vmatprep.mubr.msk.f32.mxu1 %vm3000_vm0, %v3001_v11  ;;  %v2870_v5 = vpack.c.bf16 %v1089_v4, %v1088_v1  ;;  %v2867_v9 = vpack.c.bf16 %v1087_v7, %v1086_v6  ;;  %v1091_v10 = vld [vmem:[%s3530_s6 + $0x78] sm:$0xff]  ;;  %v2487_v21 = vld [vmem:[%s3529_s5] ss:$0 sm:$0xff]  ;;  %v2488_v22 = vld [vmem:[%s3529_s5 + $0x1] ss:$0 sm:$0xff]  ;;  %p2944_p2 = por %p2943_p1, %p2942_p0 }
  0x20   : > { %v2873_v12 = vpack.c.bf16 %v1091_v10, %v1090_v8  ;;  %v2479_v24 = vld [vmem:[%s3527_s3] ss:$0 sm:$0xff]  ;;  %v2480_v28 = vld [vmem:[%s3527_s3 + $0x1] ss:$0 sm:$0xff]  ;;  %v2489_v33 = vld [vmem:[%s3529_s5 + $0x2] ss:$0 sm:$0xff] }
  0x21   : > { %2820 = vmatpush3.bf16.msra.mxu0 %v2819_v25  ;;  %2826 = vmatpush3.bf16.msra.mxu1 %v2825_v26  ;;  %v2490_v34 = vld [vmem:[%s3529_s5 + $0x3] ss:$0 sm:$0xff]  ;;  %v2481_v36 = vld [vmem:[%s3527_s3 + $0x2] ss:$0 sm:$0xff]  ;;  %v2495_v45 = vld [vmem:[%s3531_s7] ss:$0 sm:$0xff]  ;;  %p2945_p3 = pnand %p2944_p2, %p2938_p13 }
  0x22   : > { %2827 = vmatprep.subr.bf16.mxu0 %v2999_v3  ;;  %2833 = vmatprep.subr.bf16.mxu1 %v2999_v3  ;;  %v2482_v40 = vld [vmem:[%s3527_s3 + $0x3] ss:$0 sm:$0xff]  ;;  %v2496_v46 = vld [vmem:[%s3531_s7 + $0x1] ss:$0 sm:$0xff]  ;;  %v2503_v57 = vld [vmem:[%s422_s16] ss:$0 sm:$0xff] }
  0x24   : > { %2642 = vmatmul.mubr.msk.f32.vlgmr.msra.gmra.mrb[2].mxu0 %vm468_vm1, %v3168_v18  ;;  %2653 = vmatmul.mubr.msk.f32.vlgmr.msra.gmra.mrb[2].mxu1 %vm468_vm1, %v3168_v18 }
  0x25   : > { %2829 = vmatpush3.bf16.msra.mxu0 %v2828_v31  ;;  %2835 = vmatpush3.bf16.msra.mxu1 %v2834_v32 }
  0x26   : > { %2830 = vmatprep.subr.bf16.mxu0 %v2999_v3  ;;  %2836 = vmatprep.subr.bf16.mxu1 %v2999_v3 }
  0x27   : > { %2663 = vmatprep.mubr.msk.f32.mxu0 %vm3000_vm0, %v3001_v11  ;;  %2674 = vmatprep.mubr.msk.f32.mxu1 %vm3000_vm0, %v3001_v11 }
  0x29   : > { %2832 = vmatpush3.bf16.msra.mxu0 %v2831_v37  ;;  %2838 = vmatpush3.bf16.msra.mxu1 %v2837_v38 }
  0x2a   : > { %2839 = vmatprep.subr.bf16.mxu0 %v2999_v3  ;;  %2845 = vmatprep.subr.bf16.mxu1 %v2999_v3 }
  0x2c   : > { %2664 = vmatmul.mubr.msk.f32.vlgmr.msra.gmra.mrb[4].mxu0 %vm468_vm1, %v3168_v18  ;;  %2675 = vmatmul.mubr.msk.f32.vlgmr.msra.gmra.mrb[4].mxu1 %vm468_vm1, %v3168_v18 }
  0x2d   : > { %2841 = vmatpush3.bf16.msra.mxu0 %v2840_v43  ;;  %2847 = vmatpush3.bf16.msra.mxu1 %v2846_v44 }
  0x2e   : > { %2842 = vmatprep.subr.bf16.mxu0 %v2999_v3  ;;  %2848 = vmatprep.subr.bf16.mxu1 %v2999_v3 }
  0x2f   : > { %2685 = vmatprep.mubr.msk.f32.mxu0 %vm3000_vm0, %v3001_v11  ;;  %2696 = vmatprep.mubr.msk.f32.mxu1 %vm3000_vm0, %v3001_v11 }
  0x31   : > { %2844 = vmatpush3.bf16.msra.mxu0 %v2843_v49  ;;  %2850 = vmatpush3.bf16.msra.mxu1 %v2849_v50 }
  0x32   : > { %2851 = vmatprep.subr.bf16.mxu0 %v2999_v3  ;;  %2857 = vmatprep.subr.bf16.mxu1 %v2999_v3 }
  0x34   : > { %2686 = vmatmul.mubr.msk.f32.vlgmr.msra.gmra.mrb[6].mxu0 %vm468_vm1, %v3168_v18  ;;  %2697 = vmatmul.mubr.msk.f32.vlgmr.msra.gmra.mrb[6].mxu1 %vm468_vm1, %v3168_v18 }
  0x35   : > { %2853 = vmatpush3.bf16.msra.mxu0 %v2852_v55  ;;  %2859 = vmatpush3.bf16.msra.mxu1 %v2858_v56 }
  0x36   : > { %2854 = vmatprep.subr.bf16.mxu0 %v2999_v3  ;;  %2860 = vmatprep.subr.bf16.mxu1 %v2999_v3 }
  0x37   : > { %2707 = vmatprep.mubr.msk.f32.mxu0 %vm3000_vm0, %v3001_v11  ;;  %2718 = vmatprep.mubr.msk.f32.mxu1 %vm3000_vm0, %v3001_v11 }
  0x39   : > { %2856 = vmatpush3.bf16.msra.mxu0 %v2855_v60  ;;  %2862 = vmatpush3.bf16.msra.mxu1 %v2861_v62 }
  0x3a   : > { %2863 = vmatprep.subr.bf16.mxu0 %v2999_v3  ;;  %2869 = vmatprep.subr.bf16.mxu1 %v2999_v3 }
  0x3c   : > { %2708 = vmatmul.mubr.msk.f32.vlgmr.msra.gmra.mrb[8].mxu0 %vm468_vm1, %v3168_v18  ;;  %2719 = vmatmul.mubr.msk.f32.vlgmr.msra.gmra.mrb[8].mxu1 %vm468_vm1, %v3168_v18 }
  0x3d   : > { %2865 = vmatpush3.bf16.msra.mxu0 %v2864_v2  ;;  %2871 = vmatpush3.bf16.msra.mxu1 %v2870_v5 }
  0x3e   : > { %2866 = vmatprep.subr.bf16.mxu0 %v2999_v3  ;;  %2872 = vmatprep.subr.bf16.mxu1 %v2999_v3 }
  0x3f   : > { %2729 = vmatprep.mubr.msk.f32.mxu0 %vm3000_vm0, %v3001_v11  ;;  %2740 = vmatprep.mubr.msk.f32.mxu1 %vm3000_vm0, %v3001_v11 }
  0x41   : > { %2868 = vmatpush3.bf16.msra.mxu0 %v2867_v9  ;;  %2874 = vmatpush3.bf16.msra.mxu1 %v2873_v12 }
  0x42   : > { %2743 = vmatprep.subr.mxu0 %v3001_v11  ;;  %2748 = vmatprep.subr.mxu1 %v3001_v11 }
  0x44   : > { %2730 = vmatmul.mubr.msk.f32.vlgmr.msra.gmra.mrb[10].mxu0 %vm468_vm1, %v3168_v18  ;;  %2741 = vmatmul.mubr.msk.f32.vlgmr.msra.gmra.mrb[10].mxu1 %vm468_vm1, %v3168_v18 }
  0x45   : > { %2745 = vmatprep.mubr.msk.f32.mxu0 %vm3000_vm0, %v3001_v11  ;;  %2750 = vmatprep.mubr.msk.f32.mxu1 %vm3000_vm0, %v3001_v11 }
  0xef   : > { %v538_v3 = vpop.f32.mrb[0].mxu0  ;;  %v608_v14 = vpop.f32.mrb[0].mxu1 }
  0xf0   : > { %v2621_v13 = vpop.f32.mrb[1].mxu0  ;;  %v2632_v15 = vpop.f32.mrb[1].mxu1  ;;  %v539_v31 = vadd.f32 %v2479_v24, %v538_v3  ;;  %v609_v32 = vadd.f32 %v2480_v28, %v608_v14 }
  0xf7   : > { %v678_v16 = vpop.f32.mrb[2].mxu0  ;;  %v748_v19 = vpop.f32.mrb[2].mxu1 }
  0xf8   : > { %v2643_v17 = vpop.f32.mrb[3].mxu0  ;;  %v2654_v20 = vpop.f32.mrb[3].mxu1  ;;  %v679_v43 = vadd.f32 %v2481_v36, %v678_v16  ;;  %v749_v44 = vadd.f32 %v2482_v40, %v748_v19  ;;  %v2498_v40 = vld [vmem:[%s3531_s7 + $0x3] ss:$0 sm:$0xff] }
  0xff   : > { %v862_v23 = vpop.f32.mrb[4].mxu0  ;;  %v932_v26 = vpop.f32.mrb[4].mxu1 }
 0x100   : > { %v863_v25 = vadd.f32 %v2487_v21, %v862_v23  ;;  %v2665_v27 = vpop.f32.mrb[5].mxu0  ;;  %v933_v29 = vadd.f32 %v2488_v22, %v932_v26  ;;  %v2676_v30 = vpop.f32.mrb[5].mxu1 }
 0x102   : > { %2744 = vmatpush3.xpose.msk.msra.mxu0 %vm1407_vm2, %v863_v25  ;;  %2749 = vmatpush3.xpose.msk.msra.mxu1 %vm1407_vm2, %v933_v29 }
 0x103   : > { %2753 = vmatprep.subr.mxu0 %v3001_v11  ;;  %2758 = vmatprep.subr.mxu1 %v3001_v11 }
 0x105   : > { %2746 = vmatmul.mubr.msk.f32.vlgmr.msra.gmra.mrb[12].mxu0 %vm1407_vm2, %v539_v31  ;;  %2751 = vmatmul.mubr.msk.f32.vlgmr.msra.gmra.mrb[12].mxu1 %vm1407_vm2, %v609_v32 }
 0x106   : > { %2755 = vmatprep.mubr.msk.f32.mxu0 %vm3000_vm0, %v3001_v11  ;;  %2760 = vmatprep.mubr.msk.f32.mxu1 %vm3000_vm0, %v3001_v11 }
 0x107   : > { %v1002_v35 = vpop.f32.mrb[6].mxu0  ;;  %v1072_v38 = vpop.f32.mrb[6].mxu1 }
 0x108   : > { %v1003_v37 = vadd.f32 %v2489_v33, %v1002_v35  ;;  %v2687_v39 = vpop.f32.mrb[7].mxu0  ;;  %v1073_v41 = vadd.f32 %v2490_v34, %v1072_v38  ;;  %v2698_v42 = vpop.f32.mrb[7].mxu1  ;;  %v2497_v35 = vld [vmem:[%s3531_s7 + $0x2] ss:$0 sm:$0xff] }
 0x10a   : > { %2754 = vmatpush3.xpose.msk.msra.mxu0 %vm1407_vm2, %v1003_v37  ;;  %2759 = vmatpush3.xpose.msk.msra.mxu1 %vm1407_vm2, %v1073_v41 }
 0x10b   : > { %2763 = vmatprep.subr.mxu0 %v3001_v11  ;;  %2768 = vmatprep.subr.mxu1 %v3001_v11 }
 0x10d   : > { %2756 = vmatmul.mubr.msk.f32.vlgmr.msra.gmra.mrb[14].mxu0 %vm1407_vm2, %v679_v43  ;;  %2761 = vmatmul.mubr.msk.f32.vlgmr.msra.gmra.mrb[14].mxu1 %vm1407_vm2, %v749_v44 }
 0x10e   : > { %2765 = vmatprep.mubr.msk.f32.mxu0 %vm3000_vm0, %v3001_v11  ;;  %2770 = vmatprep.mubr.msk.f32.mxu1 %vm3000_vm0, %v3001_v11 }
 0x10f   : > { %v1186_v47 = vpop.f32.mrb[8].mxu0  ;;  %v1256_v50 = vpop.f32.mrb[8].mxu1 }
 0x110   : > { %v1187_v48 = vadd.f32 %v2495_v45, %v1186_v47  ;;  %v2709_v49 = vpop.f32.mrb[9].mxu0  ;;  %v1257_v51 = vadd.f32 %v2496_v46, %v1256_v50  ;;  %v2720_v52 = vpop.f32.mrb[9].mxu1  ;;  %v2050_v50 = vld [vmem:[%s3532_s8 + $0x10] sm:$0xff] }
 0x111   : > { %v2049_v49 = vld [vmem:[%s3532_s8 + $0x8] sm:$0xff] }
 0x112   : > { %2764 = vmatpush3.msra.mxu0 %v1187_v48  ;;  %2769 = vmatpush3.msra.mxu1 %v1257_v51  ;;  %v2048_v48 = vld [vmem:[%s3532_s8] sm:$0xff] }
 0x113   : > { %2773 = vmatprep.subr.mxu0 %v3001_v11  ;;  %2778 = vmatprep.subr.mxu1 %v3001_v11 }
 0x117   : > { %v3400_v53 = vpop.f32.mrb[10].mxu0  ;;  %v3402_v54 = vpop.f32.mrb[10].mxu1 }
 0x118   : > { %v2731_v55 = vpop.f32.mrb[11].mxu0  ;;  %v2742_v56 = vpop.f32.mrb[11].mxu1  ;;  %v1327_v39 = vadd.f32 %v2497_v35, %v3400_v53  ;;  %v1397_v43 = vadd.f32 %v2498_v40, %v3402_v54  ;;  %v2051_v53 = vld [vmem:[%s3532_s8 + $0x18] sm:$0xff] }
 0x1d8   : > { %v1480_v58 = vpop.f32.mrb[12].mxu0  ;;  %v1556_v60 = vpop.f32.mrb[12].mxu1 }
 0x1d9   : > { %v1481_v59 = vadd.f32 %v2503_v57, %v1480_v58  ;;  %v2747_v61 = vpop.f32.mrb[13].mxu0  ;;  %v2752_v62 = vpop.f32.mrb[13].mxu1  ;;  %v1557_v63 = vadd.f32 %v2503_v57, %v1556_v60 }
 0x1db   : > { %v1712_v0 = vsel %vm1407_vm2, %v1481_v59, -inf  ;;  %v1715_v1 = vsel %vm1407_vm2, %v1557_v63, -inf }
 0x1dc   : > { %1713 = vmax.xlane.f32.xlu0 %v1712_v0 }
 0x1e0   : > { %1716 = vmax.xlane.f32.xlu0 %v1715_v1  ;;  %v1632_v2 = vpop.f32.mrb[14].mxu0  ;;  %v1708_v4 = vpop.f32.mrb[14].mxu1 }
 0x1e1   : > { %v1633_v5 = vadd.f32 %v2503_v57, %v1632_v2  ;;  %v2757_v6 = vpop.f32.mrb[15].mxu0  ;;  %v2762_v7 = vpop.f32.mrb[15].mxu1  ;;  %v1709_v8 = vadd.f32 %v2503_v57, %v1708_v4 }
 0x1e3   : > { %v1718_v9 = vsel %vm1407_vm2, %v1633_v5, -inf  ;;  %v1721_v10 = vsel %vm1407_vm2, %v1709_v8, -inf }
 0x1e4   : > { %1719 = vmax.xlane.f32.xlu1 %v1718_v9  ;;  %v2520_v9 = vld [vmem:[%s3533_s9] ss:$0 sm:$0xff] }
 0x1e8   : > { %1722 = vmax.xlane.f32.xlu1 %v1721_v10 }
 0x269   : > { %v1714_v12 = vpop.xlane.xlu0 %1713 }
 0x26a   : > { %v1724_v3 = vsub.f32 %v1481_v59, %v1714_v12 }
 0x26c   : > { %v1728_v13 = vmul.f32 1.442695, %v1724_v3 }
 0x26d   : > { %v1717_v14 = vpop.xlane.xlu0 %1716 }
 0x26e   : > { %2917 = vpow2.f32 %v1728_v13  ;;  %v1725_v15 = vsub.f32 %v1557_v63, %v1717_v14 }
 0x270   : > { %v1730_v16 = vmul.f32 1.442695, %v1725_v15 }
 0x271   : > { %v1720_v17 = vpop.xlane.xlu1 %1719 }
 0x272   : > { %2919 = vpow2.f32 %v1730_v16  ;;  %v1726_v19 = vsub.f32 %v1633_v5, %v1720_v17 }
 0x274   : > { %v1732_v20 = vmul.f32 1.442695, %v1726_v19 }
 0x275   : > { %v1723_v21 = vpop.xlane.xlu1 %1722 }
 0x276   : > { %2921 = vpow2.f32 %v1732_v20  ;;  %v1727_v22 = vsub.f32 %v1709_v8, %v1723_v21 }
 0x278   : > { %v2918_v23 = vpop.eup %2917  ;;  %v1734_v24 = vmul.f32 1.442695, %v1727_v22 }
 0x279   : > { %v1736_v25 = vsel %vm1407_vm2, %v2918_v23, 0.0 }
 0x27a   : > { %2923 = vpow2.f32 %v1734_v24  ;;  %1737 = vadd.xlane.f32.xlu0 %v1736_v25 }
 0x27c   : > { %v2920_v26 = vpop.eup %2919 }
 0x27d   : > { %v1739_v27 = vsel %vm1407_vm2, %v2920_v26, 0.0 }
 0x27e   : > { %1740 = vadd.xlane.f32.xlu1 %v1739_v27 }
 0x280   : > { %v2922_v28 = vpop.eup %2921 }
 0x281   : > { %v1742_v29 = vsel %vm1407_vm2, %v2922_v28, 0.0 }
 0x282   : > { %1743 = vadd.xlane.f32.xlu0 %v1742_v29 }
 0x284   : > { %v2924_v30 = vpop.eup %2923 }
 0x285   : > { %v1745_v31 = vsel %vm1407_vm2, %v2924_v30, 0.0 }
 0x286   : > { %1746 = vadd.xlane.f32.xlu1 %v1745_v31 }
 0x307   : > { %v1738_v32 = vpop.xlane.xlu0 %1737 }
 0x308   : > { %2925 = vrcp.f32 %v1738_v32 }
 0x30b   : > { %v1741_v33 = vpop.xlane.xlu1 %1740 }
 0x30c   : > { %2927 = vrcp.f32 %v1741_v33 }
 0x30f   : > { %v1744_v34 = vpop.xlane.xlu0 %1743 }
 0x310   : > { %2929 = vrcp.f32 %v1744_v34 }
 0x312   : > { %v2926_v36 = vpop.eup %2925 }
 0x313   : > { %v1749_v37 = vmul.f32 %v2926_v36, %v2918_v23  ;;  %v1747_v38 = vpop.xlane.xlu1 %1746 }
 0x314   : > { %2931 = vrcp.f32 %v1747_v38 }
 0x315   : > { %2766 = vmatmul.mubr.msk.f32.vlgmr.msra.gmra.mrb[16].mxu0 %vm1407_vm2, %v1749_v37 }
 0x316   : > { %v2928_v41 = vpop.eup %2927  ;;  %2774 = vmatpush3.msra.mxu0 %v1327_v39  ;;  %2775 = vmatprep.mubr.msk.f32.mxu0 %vm3000_vm0, %v3001_v11 }
 0x317   : > { %v1751_v42 = vmul.f32 %v2928_v41, %v2920_v26  ;;  %2783 = vmatprep.subr.mxu0 %v3001_v11  ;;  %v2522_v26 = vld [vmem:[%s3535_s11] ss:$0 sm:$0xff] }
 0x319   : > { %2771 = vmatmul.mubr.msk.f32.vlgmr.msra.gmra.mrb[16].mxu1 %vm1407_vm2, %v1751_v42 }
 0x31a   : > { %v2930_v44 = vpop.eup %2929  ;;  %2779 = vmatpush3.msra.mxu1 %v1397_v43  ;;  %2780 = vmatprep.mubr.msk.f32.mxu1 %vm3000_vm0, %v3001_v11 }
 0x31b   : > { %v1753_v45 = vmul.f32 %v2930_v44, %v2922_v28  ;;  %2788 = vmatprep.subr.mxu1 %v3001_v11 }
 0x31d   : > { %2776 = vmatmul.mubr.msk.f32.vlgmr.msra.gmra.mrb[18].mxu0 %vm1407_vm2, %v1753_v45 }
 0x31e   : > { %v2932_v46 = vpop.eup %2931  ;;  %2785 = vmatprep.mubr.msk.f32.mxu0 %vm3000_vm0, %v3001_v11  ;;  %2784 = vmatpush3.msra.mxu0 %v2048_v48 }
 0x31f   : > { %v1755_v47 = vmul.f32 %v2932_v46, %v2924_v30  ;;  %2793 = vmatprep.subr.mxu0 %v3001_v11 }
 0x321   : > { %2781 = vmatmul.mubr.msk.f32.vlgmr.msra.gmra.mrb[18].mxu1 %vm1407_vm2, %v1755_v47 }
 0x322   : > { %2790 = vmatprep.mubr.msk.f32.mxu1 %vm3000_vm0, %v3001_v11  ;;  %2789 = vmatpush3.msra.mxu1 %v2049_v49 }
 0x323   : > { %2798 = vmatprep.subr.mxu1 %v3001_v11 }
 0x3e8   : > { %v1825_v51 = vpop.f32.mrb[16].mxu0 }
 0x3e9   : > { %v2767_v52 = vpop.f32.mrb[17].mxu0  ;;  %2786 = vmatmul.mubr.msk.f32.vlgmr.msra.gmra.mrb[20].mxu0 %vm1407_vm2, %v1825_v51 }
 0x3ea   : > { %2794 = vmatpush3.msra.mxu0 %v2050_v50  ;;  %2795 = vmatprep.mubr.msk.f32.mxu0 %vm3000_vm0, %v3001_v11 }
 0x3ec   : > { %v1898_v54 = vpop.f32.mrb[16].mxu1 }
 0x3ed   : > { %v2772_v55 = vpop.f32.mrb[17].mxu1  ;;  %2791 = vmatmul.mubr.msk.f32.vlgmr.msra.gmra.mrb[20].mxu1 %vm1407_vm2, %v1898_v54 }
 0x3ee   : > { %2799 = vmatpush3.msra.mxu1 %v2051_v53  ;;  %2800 = vmatprep.mubr.msk.f32.mxu1 %vm3000_vm0, %v3001_v11 }
 0x3f0   : > { %v1971_v56 = vpop.f32.mrb[18].mxu0 }
 0x3f1   : > { %v2777_v57 = vpop.f32.mrb[19].mxu0  ;;  %2796 = vmatmul.mubr.msk.f32.vlgmr.msra.gmra.mrb[22].mxu0 %vm1407_vm2, %v1971_v56 }
 0x3f4   : > { %v2044_v58 = vpop.f32.mrb[18].mxu1 }
 0x3f5   : > { %v2782_v59 = vpop.f32.mrb[19].mxu1  ;;  %2801 = vmatmul.mubr.msk.f32.vlgmr.msra.gmra.mrb[22].mxu1 %vm1407_vm2, %v2044_v58 }
 0x4bc   : > { %v2121_v60 = vpop.f32.mrb[20].mxu0 }
 0x4bd   : > { %v2787_v61 = vpop.f32.mrb[21].mxu0  ;;  %v2344_v63 = vsel %vm468_vm1, %v2121_v60, 0.0 }
 0x4c0   : > { %v2194_v62 = vpop.f32.mrb[20].mxu1 }
 0x4c1   : > { %v2345_v0 = vsel %vm468_vm1, %v2194_v62, 0.0  ;;  %v2792_v1 = vpop.f32.mrb[21].mxu1 }
 0x4c2   : > { %v2346_v2 = vadd.f32 %v2345_v0, %v2344_v63 }
 0x4c4   : > { %v2267_v4 = vpop.f32.mrb[22].mxu0 }
 0x4c5   : > { %v2347_v11 = vsel %vm468_vm1, %v2267_v4, 0.0  ;;  %v2797_v5 = vpop.f32.mrb[23].mxu0 }
 0x4c6   : > { %v2348_v6 = vadd.f32 %v2347_v11, %v2346_v2 }
 0x4c8   : > { %v2340_v7 = vpop.f32.mrb[22].mxu1 }
 0x4c9   : > { %v2349_v8 = vsel %vm468_vm1, %v2340_v7, 0.0  ;;  %v2802_v10 = vpop.f32.mrb[23].mxu1 }
 0x4ca   : > { %v2350_v12 = vadd.f32 %v2349_v8, %v2348_v6 }
 0x4cc   : > { %v2358_v3 = vadd.f32 %v2520_v9, %v2350_v12 }
 0x4ce   : > { %v2359_v13 = vadd.f32 %v2358_v3, %v3168_v18  ;;  %v2521_v18 = vld [vmem:[%s3534_s10] ss:$0 sm:$0xff] }
 0x4d0   : > { %v2360_v14 = vsel %vm468_vm1, %v2359_v13, 0.0 }
 0x4d1   : > { %2361 = vadd.xlane.f32.xlu0 %v2360_v14 }
 0x55e   : > { %v2362_v15 = vpop.xlane.xlu0 %2361 }
 0x55f   : > { %v2364_v16 = vmul.f32 0.03125, %v2362_v15 }
 0x561   : > { %v2365_v17 = vsub.f32 %v2359_v13, %v2364_v16 }
 0x563   : > { %v2366_v19 = vmul.f32 %v2365_v17, %v2365_v17 }
 0x565   : > { %v2367_v20 = vsel %vm468_vm1, %v2366_v19, 0.0 }
 0x566   : > { %2368 = vadd.xlane.f32.xlu1 %v2367_v20 }
 0x5f3   : > { %v2369_v21 = vpop.xlane.xlu1 %2368 }
 0x5f4   : > { %v2370_v22 = vmul.f32 0.03125, %v2369_v21 }
 0x5f6   : > { %v2371_v23 = vadd.f32 1e-12, %v2370_v22 }
 0x5f8   : > { %2933 = vrsqrt.f32 %v2371_v23 }
 0x602   : > { %v2934_v24 = vpop.eup %2933 }
 0x603   : > { %v2373_v25 = vmul.f32 %v2934_v24, %v2365_v17 }
 0x605   : > { %v2381_v27 = vmul.f32 %v2521_v18, %v2373_v25 }
 0x607   : > { %v2389_v28 = vadd.f32 %v2522_v26, %v2381_v27 }
 0x609   : > { %2390 = vst.msk [vmem:[%s415_s23] sm:$0xff] %vm468_vm1, %v2389_v28 }
 0x60a   : > { %2948 = shalt.err (!%p2945_p3)
}
 0x60b   : > { %s2949_s19 = scalar_lea.hbm %s3481_s18, 128  ;;  %s2953_s23 = scalar_lea.hbm %s3536_s12, 256 }
 0x60c   : > { %p2950_p4 = scmp.ne.s32.totalorder %s3481_s18, %s2949_s19  ;;  %p2954_p9 = scmp.lt.u32.totalorder %s3481_s18, %s3536_s12 }
 0x60d   : > { %p2955_p10 = scmp.lt.u32.totalorder %s2953_s23, %s2949_s19  ;;  %p2957_p12 = scmp.lt.u32.totalorder %s2949_s19, %s3481_s18 }
 0x60e   : > { %p2951_p7 = pnand %p2950_p4, %p3106_p5 }
 0x60f   : > { %p2956_p11 = por %p2955_p10, %p2954_p9 }
 0x610   : > { %p2952_p8 = pneg %p2951_p7 }
 0x611   : > { %p2958_p13 = por %p2957_p12, %p2956_p11 }
 0x613   : > { %p2959_p0 = pnand %p2958_p13, %p2952_p8 }
 0x615   : > { %2962 = shalt.err (!%p2959_p0)
}
 0x616   : > { %2875 = dma.vmem_to_hbm [thread:$0]  (%p3106_p5), %s3483_s27, 128, %s3481_s18, %s2392_s28  }
 0x617 PF: > { %p2881_p1 = scmp.ge.s32.totalorder %s2997_s24, 2  ;;  %s2417_s30 = sand.u32 1, %s2985_s21  }
 0x618   : > { %s2418_s25 = scalar_lea.sflag [#allocation3], %s2417_s30 }
 0x619   : > { %p2878_p2 = pnand %p2881_p1, %p3110_p6 }
 0x61b   : > { %2980 = dma.done.wait (!%p2878_p2), %s2418_s25, 128  }
 0x61c   : > { %2982 = vsyncadd (!%p2878_p2), %s2418_s25, 4294967168  ;;  %s3545_s24 = sld [smem:[#allocation6_spill]]  ;;  %s3546_s20 = sld [smem:[#allocation5_spill]] }
 0x61d   : > { %s3547_s23 = sld [smem:[#allocation7_spill]]  ;;  %s3548_s21 = smov %s2989_s22 }
 0x622   : > { %p22_p3 = scmp.ge.s32.totalorder %s3545_s24, 4   ;;  %s3549_s22 = smov %s3546_s20 }
 0x624   :  { %24 = sbr.rel (!%p22_p3) target bundleno = 3 (0x3), region = 106 }
 0x62b   :  { %2423 = vsyncpa [#allocation3], 1 }
 0x62c   :  { %2425 = vsyncpa [#allocation3 + $0x1], 1 }

</bundles_post_ra>
